<compile_context>
chip_gen: v6e
topology: v6e:2x2x1
jax: 0.10.0
libtpu: 0.0.40
codegen_flags: <defaults>
</compile_context>

<pallas_src>
import functools

import jax
import jax.numpy as jnp
from jax.experimental import pallas as pl
from jax.experimental.pallas import tpu as pltpu


def _round_up(x, m):
    return (x + m - 1) // m * m


def hybrid_nn_cls_kernel(x_ref, w1_ref, b1_ref, w2_ref, b2_ref, o_ref):
    # Layer 1: x @ W1^T   (W1 pre-transposed to (n, hd)); f32 accumulation.
    x = x_ref[...].astype(w1_ref.dtype)
    h = jnp.dot(x, w1_ref[...], preferred_element_type=jnp.float32)
    h = jnp.maximum(h + b1_ref[...], 0.0)                 # bias + ReLU in f32
    # Layer 2: h @ W2^T   (W2 pre-transposed to (hd, n_cls)); f32 accumulation.
    out = jnp.dot(h.astype(w2_ref.dtype), w2_ref[...],
                  preferred_element_type=jnp.float32)
    o_ref[...] = (out + b2_ref[...]).astype(o_ref.dtype)


def prepare_params(w1, b1, w2, b2, compute_dtype=jnp.bfloat16):
    """One-time parameter prep (transpose + cast).  Call at init, reuse every step.

    w1: (hd, n)  ffw1.weight      b1: (hd,)  ffw1.bias
    w2: (n_cls, hd) ffw2.weight   b2: (n_cls,) ffw2.bias
    """
    cdt = jnp.dtype(compute_dtype)
    w1t = jnp.asarray(w1).T.astype(cdt)                        # (n, hd)
    b1r = jnp.asarray(b1).astype(jnp.float32).reshape(1, -1)   # (1, hd)  f32
    w2t = jnp.asarray(w2).T.astype(cdt)                        # (hd, n_cls)
    b2r = jnp.asarray(b2).astype(jnp.float32).reshape(1, -1)   # (1, n_cls) f32
    return w1t, b1r, w2t, b2r


@functools.partial(jax.jit, static_argnames=("block_m",))
def hybrid_nn_cls_forward(x, params, *, block_m=1024):
    """x: (B, n), params from prepare_params -> (B, n_cls) float32."""
    w1t, b1r, w2t, b2r = params
    B, n = x.shape
    n_in, hd = w1t.shape
    n_cls = w2t.shape[1]
    assert n == n_in, f"feature dim mismatch: x has {n}, weights expect {n_in}"

    # Batch tile: single big tile for small B (grid=(1,)); always a multiple
    # of 8 sublanes so (8,128) tiling holds when b_pad != tm.
    tm = _round_up(min(block_m, B), 8)
    b_pad = _round_up(B, tm)
    x_in = x if b_pad == B else jnp.pad(x, ((0, b_pad - B), (0, 0)))

    grid = (b_pad // tm,)

    # CostEstimate on true (unpadded) dims — advisory only.
    flops = 2 * B * (n * hd + hd * n_cls)
    bytes_accessed = (B * n * x.dtype.itemsize
                      + w1t.size * w1t.dtype.itemsize
                      + w2t.size * w2t.dtype.itemsize
                      + b1r.size * 4 + b2r.size * 4
                      + B * n_cls * 4)

    out = pl.pallas_call(
        hybrid_nn_cls_kernel,
        out_shape=jax.ShapeDtypeStruct((b_pad, n_cls), jnp.float32),
        grid_spec=pltpu.PrefetchScalarGridSpec(
            num_scalar_prefetch=0,
            grid=grid,
            in_specs=[
                # x streams per batch tile, unpadded lanes (last dim == full dim).
                pl.BlockSpec((tm, n), lambda i: (i, 0)),
                # Tiny weights/biases stay VMEM-resident (constant index_map).
                pl.BlockSpec((n, hd), lambda i: (0, 0)),
                pl.BlockSpec((1, hd), lambda i: (0, 0)),
                pl.BlockSpec((hd, n_cls), lambda i: (0, 0)),
                pl.BlockSpec((1, n_cls), lambda i: (0, 0)),
            ],
            # Narrow (tm, n_cls) writeback — no padded lanes in HBM.
            out_specs=pl.BlockSpec((tm, n_cls), lambda i: (i, 0)),
        ),
        compiler_params=pltpu.CompilerParams(
            # Shards batch tiles across v7x's 2 TensorCores when grid >= 2;
            # harmless (no-op) for a single-step grid or on v5e/v6e.
            dimension_semantics=("parallel",),
        ),
        cost_estimate=pl.CostEstimate(
            flops=flops, transcendentals=0, bytes_accessed=bytes_accessed),
    )(x_in, w1t, b1r, w2t, b2r)

    if b_pad != B:
        out = out[:B]
    return out


def reference_forward(x, w1, b1, w2, b2):
    h = jnp.maximum(x @ w1.T + b1, 0.0)
    return h @ w2.T + b2


if __name__ == "__main__":
    # Small shapes consistent with the module: n features, hd hidden, 4 classes.
    B, n, hd, n_cls = 256, 16, 32, 4

    key = jax.random.PRNGKey(0)
    kx, kw1, kb1, kw2, kb2 = jax.random.split(key, 5)

    x = jax.random.normal(kx, (B, n), dtype=jnp.float32)
    # Deterministic synthetic parameters (same shapes as nn.Linear weights/biases).
    w1 = jax.random.normal(kw1, (hd, n), dtype=jnp.float32) * 0.1      # ffw1.weight
    b1 = jax.random.normal(kb1, (hd,), dtype=jnp.float32) * 0.1        # ffw1.bias
    w2 = jax.random.normal(kw2, (n_cls, hd), dtype=jnp.float32) * 0.1  # ffw2.weight
    b2 = jax.random.normal(kb2, (n_cls,), dtype=jnp.float32) * 0.1     # ffw2.bias

    ref = reference_forward(x, w1, b1, w2, b2)

    # f32 compute path, single-step grid (tm == B, grid=(1,)).
    params_f32 = prepare_params(w1, b1, w2, b2, compute_dtype=jnp.float32)
    out = jax.block_until_ready(hybrid_nn_cls_forward(x, params_f32))
    assert out.shape == (B, n_cls)
    assert jnp.allclose(out, ref, atol=1e-4, rtol=1e-4), "f32 mismatch vs reference"

    # bf16 default fast path (f32 accumulation), multi-step grid exercises
    # the double-buffered x/out streams.
    params_bf16 = prepare_params(w1, b1, w2, b2)  # bf16 weights by default
    out_bf16 = jax.block_until_ready(
        hybrid_nn_cls_forward(x, params_bf16, block_m=64))
    assert out_bf16.shape == (B, n_cls)
    assert jnp.allclose(out_bf16, ref, atol=5e-2, rtol=5e-2), "bf16 mismatch vs reference"

    # Non-divisible batch exercises the pad + de-pad path.
    x_odd = x[:250]
    ref_odd = reference_forward(x_odd, w1, b1, w2, b2)
    out_odd = jax.block_until_ready(
        hybrid_nn_cls_forward(x_odd, params_bf16, block_m=64))
    assert out_odd.shape == (250, n_cls)
    assert jnp.allclose(out_odd, ref_odd, atol=5e-2, rtol=5e-2), "padded-batch mismatch"

    # TODO(synk): BatchNorm1d / Dropout exist in __init__ but are unused in
    # forward(), so they are intentionally omitted from the kernel.

    print("KERNEL_OK")
</pallas_src>

<mosaic_0001>
module attributes {stable_mosaic.version = 11 : i64} {
  func.func @hybrid_nn_cls_kernel(%arg0: i32, %arg1: memref<256x16xf32, #tpu.memory_space<vmem>>, %arg2: memref<16x32xf32, #tpu.memory_space<vmem>>, %arg3: memref<1x32xf32, #tpu.memory_space<vmem>>, %arg4: memref<32x4xf32, #tpu.memory_space<vmem>>, %arg5: memref<1x4xf32, #tpu.memory_space<vmem>>, %arg6: memref<256x4xf32, #tpu.memory_space<vmem>>) attributes {dimension_semantics = [#tpu.dimension_semantics<parallel>], iteration_bounds = array<i64: 1>, scalar_prefetch = 0 : i64, scratch_operands = 0 : i64, tpu.core_type = #tpu.core_type<tc>, window_params = [{transform_indices = @transform_0, window_bounds = array<i64: 256, 16>}, {pipeline_mode = #tpu.pipeline_mode<synchronous>, transform_indices = @transform_1, window_bounds = array<i64: 16, 32>}, {pipeline_mode = #tpu.pipeline_mode<synchronous>, transform_indices = @transform_2, window_bounds = array<i64: 1, 32>}, {pipeline_mode = #tpu.pipeline_mode<synchronous>, transform_indices = @transform_3, window_bounds = array<i64: 32, 4>}, {pipeline_mode = #tpu.pipeline_mode<synchronous>, transform_indices = @transform_4, window_bounds = array<i64: 1, 4>}, {transform_indices = @transform_5, window_bounds = array<i64: 256, 4>}]} {
    %c0 = arith.constant 0 : index
    %c0_0 = arith.constant 0 : index
    %0 = vector.load %arg1[%c0, %c0_0] : memref<256x16xf32, #tpu.memory_space<vmem>>, vector<256x16xf32>
    %c0_1 = arith.constant 0 : index
    %c0_2 = arith.constant 0 : index
    %1 = vector.load %arg2[%c0_1, %c0_2] : memref<16x32xf32, #tpu.memory_space<vmem>>, vector<16x32xf32>
    %cst = arith.constant dense<0.000000e+00> : vector<256x32xf32>
    %2 = tpu.matmul %0, %1, %cst {dimension_numbers = #tpu.dot_dimension_numbers<[1], [0], [0], [1], [0, 0, 1, 1], [], []>} : vector<256x16xf32>, vector<16x32xf32>, vector<256x32xf32> -> vector<256x32xf32>
    %c0_3 = arith.constant 0 : index
    %c0_4 = arith.constant 0 : index
    %3 = vector.load %arg3[%c0_3, %c0_4] : memref<1x32xf32, #tpu.memory_space<vmem>>, vector<1x32xf32>
    %4 = vector.broadcast %3 : vector<1x32xf32> to vector<256x32xf32>
    %5 = arith.addf %2, %4 : vector<256x32xf32>
    %cst_5 = arith.constant 0.000000e+00 : f32
    %6 = vector.broadcast %cst_5 : f32 to vector<256x32xf32>
    %7 = arith.maximumf %5, %6 : vector<256x32xf32>
    %c0_6 = arith.constant 0 : index
    %c0_7 = arith.constant 0 : index
    %8 = vector.load %arg4[%c0_6, %c0_7] : memref<32x4xf32, #tpu.memory_space<vmem>>, vector<32x4xf32>
    %cst_8 = arith.constant dense<0.000000e+00> : vector<256x4xf32>
    %9 = tpu.matmul %7, %8, %cst_8 {dimension_numbers = #tpu.dot_dimension_numbers<[1], [0], [0], [1], [0, 0, 1, 1], [], []>} : vector<256x32xf32>, vector<32x4xf32>, vector<256x4xf32> -> vector<256x4xf32>
    %c0_9 = arith.constant 0 : index
    %c0_10 = arith.constant 0 : index
    %10 = vector.load %arg5[%c0_9, %c0_10] : memref<1x4xf32, #tpu.memory_space<vmem>>, vector<1x4xf32>
    %11 = vector.broadcast %10 : vector<1x4xf32> to vector<256x4xf32>
    %12 = arith.addf %9, %11 : vector<256x4xf32>
    %c0_11 = arith.constant 0 : index
    %c0_12 = arith.constant 0 : index
    %13 = vector.load %arg6[%c0_11, %c0_12] : memref<256x4xf32, #tpu.memory_space<vmem>>, vector<256x4xf32>
    tpu.vector_store %arg6[%c0_11, %c0_12], %12 {strides = array<i32>} : memref<256x4xf32, #tpu.memory_space<vmem>>, vector<256x4xf32>,
    return
  }
  func.func @transform_0(%arg0: i32) -> (i32, i32) {
    %c0_i32 = arith.constant 0 : i32
    %c0_i32_0 = arith.constant 0 : i32
    return %arg0, %c0_i32 : i32, i32
  }
  func.func @transform_1(%arg0: i32) -> (i32, i32) {
    %c0_i32 = arith.constant 0 : i32
    %c0_i32_0 = arith.constant 0 : i32
    %c0_i32_1 = arith.constant 0 : i32
    return %c0_i32, %c0_i32_0 : i32, i32
  }
  func.func @transform_2(%arg0: i32) -> (i32, i32) {
    %c0_i32 = arith.constant 0 : i32
    %c0_i32_0 = arith.constant 0 : i32
    %c0_i32_1 = arith.constant 0 : i32
    return %c0_i32, %c0_i32_0 : i32, i32
  }
  func.func @transform_3(%arg0: i32) -> (i32, i32) {
    %c0_i32 = arith.constant 0 : i32
    %c0_i32_0 = arith.constant 0 : i32
    %c0_i32_1 = arith.constant 0 : i32
    return %c0_i32, %c0_i32_0 : i32, i32
  }
  func.func @transform_4(%arg0: i32) -> (i32, i32) {
    %c0_i32 = arith.constant 0 : i32
    %c0_i32_0 = arith.constant 0 : i32
    %c0_i32_1 = arith.constant 0 : i32
    return %c0_i32, %c0_i32_0 : i32, i32
  }
  func.func @transform_5(%arg0: i32) -> (i32, i32) {
    %c0_i32 = arith.constant 0 : i32
    %c0_i32_0 = arith.constant 0 : i32
    return %arg0, %c0_i32 : i32, i32
  }
}

</mosaic_0001>

<bundles_post_ra>
// kernel: hybrid_nn_cls_forward.1
= control target key start
LH: loop header
LB: loop body
LE: loop exit
PB: predicated region body
PF: predicated region fallthrough
CT: control target
= control target key end

     0   :  { %vm61_vm0 = vcmask 130048   ;;  %vm426_vm1 = vcmask 261120   ;;  %vm748_vm2 = vcmask 31744   ;;  %s1439_s1 = inlined_call_operand.vmem [shape: f32[16,32], index: 1, kind: input, shape index: {}]   ;;  %s1440_s0 = inlined_call_operand.vmem [shape: f32[256,16], index: 0, kind: input, shape index: {}]   ;;  %s1441_s3 = inlined_call_operand.vmem [shape: f32[32,4], index: 3, kind: input, shape index: {}]   ;;  %s1442_s2 = inlined_call_operand.vmem [shape: f32[1,32], index: 2, kind: input, shape index: {}]   ;;  %s1443_s4 = inlined_call_operand.vmem [shape: f32[1,4], index: 4, kind: input, shape index: {}]   ;;  %s1444_s5 = inlined_call_operand.vmem [shape: f32[256,4], index: 5, kind: output, shape index: {}]  }
   0x1   :  { %v53_v0 = vld [vmem:[%s1439_s1 + $0x8] sm:$0xff]  ;;  %v52_v1 = vld [vmem:[%s1439_s1] sm:$0xff]  ;;  %v22_v4 = vld [vmem:[%s1440_s0 + $0x10] sm:$0xff] }
   0x2   :  { %v20_v2 = vld [vmem:[%s1440_s0] sm:$0xff]  ;;  %921 = vmatprep.subr.mxu0 %v53_v0  ;;  %v21_v3 = vld [vmem:[%s1440_s0 + $0x8] sm:$0xff]  ;;  %v23_v5 = vld [vmem:[%s1440_s0 + $0x18] sm:$0xff] }
   0x3   :  { %925 = vmatprep.mubr.msk.f32.mxu0 %vm61_vm0, %v20_v2  ;;  %922 = vmatpush3.msra.mxu0 %v53_v0  ;;  %v24_v6 = vld [vmem:[%s1440_s0 + $0x20] sm:$0xff]  ;;  %v25_v7 = vld [vmem:[%s1440_s0 + $0x28] sm:$0xff]  ;;  %v26_v8 = vld [vmem:[%s1440_s0 + $0x30] sm:$0xff] }
   0x4   :  { %923 = vmatprep.subr.mxu0 %v52_v1  ;;  %v27_v9 = vld [vmem:[%s1440_s0 + $0x38] sm:$0xff]  ;;  %v28_v10 = vld [vmem:[%s1440_s0 + $0x40] sm:$0xff]  ;;  %v29_v11 = vld [vmem:[%s1440_s0 + $0x48] sm:$0xff] }
   0x5   :  { %924 = vmatpush3.msra.mxu0 %v52_v1  ;;  %v30_v12 = vld [vmem:[%s1440_s0 + $0x50] sm:$0xff]  ;;  %v31_v13 = vld [vmem:[%s1440_s0 + $0x58] sm:$0xff]  ;;  %v32_v14 = vld [vmem:[%s1440_s0 + $0x60] sm:$0xff] }
   0x6   :  { %926 = vmatmul.mubr.msk.f32.vlgmr.msra.gmra.mxu0 %vm61_vm0, %v21_v3  ;;  %v33_v15 = vld [vmem:[%s1440_s0 + $0x68] sm:$0xff]  ;;  %v34_v16 = vld [vmem:[%s1440_s0 + $0x70] sm:$0xff]  ;;  %v35_v17 = vld [vmem:[%s1440_s0 + $0x78] sm:$0xff] }
   0x7   :  { %928 = vmatprep.mubr.msk.f32.mxu0 %vm61_vm0, %v22_v4  ;;  %v36_v18 = vld [vmem:[%s1440_s0 + $0x80] sm:$0xff]  ;;  %v37_v19 = vld [vmem:[%s1440_s0 + $0x88] sm:$0xff]  ;;  %v38_v20 = vld [vmem:[%s1440_s0 + $0x90] sm:$0xff] }
   0x8   :  { %v39_v21 = vld [vmem:[%s1440_s0 + $0x98] sm:$0xff]  ;;  %v40_v22 = vld [vmem:[%s1440_s0 + $0xa0] sm:$0xff]  ;;  %v41_v23 = vld [vmem:[%s1440_s0 + $0xa8] sm:$0xff] }
   0x9   :  { %v42_v24 = vld [vmem:[%s1440_s0 + $0xb0] sm:$0xff]  ;;  %v43_v25 = vld [vmem:[%s1440_s0 + $0xb8] sm:$0xff]  ;;  %v44_v26 = vld [vmem:[%s1440_s0 + $0xc0] sm:$0xff] }
   0xa   :  { %929 = vmatmul.mubr.msk.f32.gmra.mxu0 %vm61_vm0, %v23_v5  ;;  %v45_v27 = vld [vmem:[%s1440_s0 + $0xc8] sm:$0xff]  ;;  %v46_v28 = vld [vmem:[%s1440_s0 + $0xd0] sm:$0xff]  ;;  %v47_v29 = vld [vmem:[%s1440_s0 + $0xd8] sm:$0xff] }
   0xb   :  { %931 = vmatprep.mubr.msk.f32.mxu0 %vm61_vm0, %v24_v6  ;;  %v48_v30 = vld [vmem:[%s1440_s0 + $0xe0] sm:$0xff]  ;;  %v49_v31 = vld [vmem:[%s1440_s0 + $0xe8] sm:$0xff]  ;;  %v50_v32 = vld [vmem:[%s1440_s0 + $0xf0] sm:$0xff] }
   0xc   :  { %v51_v33 = vld [vmem:[%s1440_s0 + $0xf8] sm:$0xff]  ;;  %v417_v35 = vld [vmem:[%s1441_s3 + $0x10] sm:$0xff]  ;;  %v416_v36 = vld [vmem:[%s1441_s3 + $0x8] sm:$0xff] }
   0xd   :  { %v418_v34 = vld [vmem:[%s1441_s3 + $0x18] sm:$0xff]  ;;  %v415_v37 = vld [vmem:[%s1441_s3] sm:$0xff] }
   0xe   :  { %932 = vmatmul.mubr.msk.f32.gmra.mxu0 %vm61_vm0, %v25_v7  ;;  %973 = vmatprep.subr.mxu1 %v418_v34  ;;  %v1208_v38 = vld [vmem:[%s1442_s2] ss:$0 sm:$0xff] }
   0xf   :  { %934 = vmatprep.mubr.msk.f32.mxu0 %vm61_vm0, %v26_v8  ;;  %974 = vmatpush3.msra.mxu1 %v418_v34 }
  0x10   :  { %975 = vmatprep.subr.mxu1 %v417_v35 }
  0x11   :  { %976 = vmatpush3.msra.mxu1 %v417_v35 }
  0x12   :  { %935 = vmatmul.mubr.msk.f32.gmra.mxu0 %vm61_vm0, %v27_v9  ;;  %977 = vmatprep.subr.mxu1 %v416_v36 }
  0x13   :  { %937 = vmatprep.mubr.msk.f32.mxu0 %vm61_vm0, %v28_v10  ;;  %978 = vmatpush3.msra.mxu1 %v416_v36 }
  0x14   :  { %979 = vmatprep.subr.mxu1 %v415_v37 }
  0x15   :  { %980 = vmatpush3.msra.mxu1 %v415_v37 }
  0x16   :  { %938 = vmatmul.mubr.msk.f32.gmra.mxu0 %vm61_vm0, %v29_v11 }
  0x17   :  { %940 = vmatprep.mubr.msk.f32.mxu0 %vm61_vm0, %v30_v12 }
  0x1a   :  { %941 = vmatmul.mubr.msk.f32.gmra.mxu0 %vm61_vm0, %v31_v13 }
  0x1b   :  { %943 = vmatprep.mubr.msk.f32.mxu0 %vm61_vm0, %v32_v14 }
  0x1e   :  { %944 = vmatmul.mubr.msk.f32.gmra.mxu0 %vm61_vm0, %v33_v15 }
  0x1f   :  { %946 = vmatprep.mubr.msk.f32.mxu0 %vm61_vm0, %v34_v16 }
  0x22   :  { %947 = vmatmul.mubr.msk.f32.gmra.mxu0 %vm61_vm0, %v35_v17 }
  0x23   :  { %949 = vmatprep.mubr.msk.f32.mxu0 %vm61_vm0, %v36_v18 }
  0x26   :  { %950 = vmatmul.mubr.msk.f32.gmra.mxu0 %vm61_vm0, %v37_v19 }
  0x27   :  { %952 = vmatprep.mubr.msk.f32.mxu0 %vm61_vm0, %v38_v20 }
  0x2a   :  { %953 = vmatmul.mubr.msk.f32.gmra.mxu0 %vm61_vm0, %v39_v21 }
  0x2b   :  { %955 = vmatprep.mubr.msk.f32.mxu0 %vm61_vm0, %v40_v22 }
  0x2e   :  { %956 = vmatmul.mubr.msk.f32.gmra.mxu0 %vm61_vm0, %v41_v23 }
  0x2f   :  { %958 = vmatprep.mubr.msk.f32.mxu0 %vm61_vm0, %v42_v24 }
  0x32   :  { %959 = vmatmul.mubr.msk.f32.gmra.mxu0 %vm61_vm0, %v43_v25 }
  0x33   :  { %961 = vmatprep.mubr.msk.f32.mxu0 %vm61_vm0, %v44_v26 }
  0x36   :  { %962 = vmatmul.mubr.msk.f32.gmra.mxu0 %vm61_vm0, %v45_v27 }
  0x37   :  { %964 = vmatprep.mubr.msk.f32.mxu0 %vm61_vm0, %v46_v28 }
  0x3a   :  { %965 = vmatmul.mubr.msk.f32.gmra.mxu0 %vm61_vm0, %v47_v29 }
  0x3b   :  { %967 = vmatprep.mubr.msk.f32.mxu0 %vm61_vm0, %v48_v30 }
  0x3e   :  { %968 = vmatmul.mubr.msk.f32.gmra.mxu0 %vm61_vm0, %v49_v31 }
  0x3f   :  { %970 = vmatprep.mubr.msk.f32.mxu0 %vm61_vm0, %v50_v32 }
  0x42   :  { %971 = vmatmul.mubr.msk.f32.gmra.mxu0 %vm61_vm0, %v51_v33 }
  0xc6   :  { %v927_v39 = vpop.f32.mrf.mxu0 }
  0xc7   :  { %v230_v40 = vadd.f32 %v927_v39, %v1208_v38 }
  0xc8   :  { %v224_v41 = vpop.f32.mrf.mxu0 }
  0xc9   :  { %v225_v42 = vadd.f32 %v1208_v38, %v224_v41  ;;  %v384_v45 = vmax.f32 %v230_v40, 0.0 }
  0xca   :  { %v930_v43 = vpop.f32.mrf.mxu0 }
  0xcb   :  { %v383_v44 = vmax.f32 %v225_v42, 0.0  ;;  %v240_v46 = vadd.f32 %v930_v43, %v1208_v38 }
  0xcc   :  { %v234_v47 = vpop.f32.mrf.mxu0 }
  0xcd   :  { %v235_v48 = vadd.f32 %v1208_v38, %v234_v47  ;;  %981 = vmatprep.mubr.msk.f32.mxu1 %vm426_vm1, %v383_v44  ;;  %v386_v51 = vmax.f32 %v240_v46, 0.0 }
  0xce   :  { %v933_v49 = vpop.f32.mrf.mxu0  ;;  %982 = vmatmul.mubr.msk.f32.vlgmr.msra.gmra.mxu1 %vm426_vm1, %v384_v45 }
  0xcf   :  { %v385_v50 = vmax.f32 %v235_v48, 0.0  ;;  %v250_v52 = vadd.f32 %v933_v49, %v1208_v38 }
  0xd0   :  { %v244_v53 = vpop.f32.mrf.mxu0 }
  0xd1   :  { %v245_v54 = vadd.f32 %v1208_v38, %v244_v53  ;;  %984 = vmatprep.mubr.msk.f32.mxu1 %vm426_vm1, %v385_v50  ;;  %v388_v57 = vmax.f32 %v250_v52, 0.0 }
  0xd2   :  { %v936_v55 = vpop.f32.mrf.mxu0  ;;  %985 = vmatmul.mubr.msk.f32.gmra.mxu1 %vm426_vm1, %v386_v51 }
  0xd3   :  { %v387_v56 = vmax.f32 %v245_v54, 0.0  ;;  %v260_v58 = vadd.f32 %v936_v55, %v1208_v38 }
  0xd4   :  { %v254_v59 = vpop.f32.mrf.mxu0 }
  0xd5   :  { %v255_v60 = vadd.f32 %v1208_v38, %v254_v59  ;;  %987 = vmatprep.mubr.msk.f32.mxu1 %vm426_vm1, %v387_v56  ;;  %v390_v63 = vmax.f32 %v260_v58, 0.0 }
  0xd6   :  { %v939_v61 = vpop.f32.mrf.mxu0  ;;  %988 = vmatmul.mubr.msk.f32.gmra.mxu1 %vm426_vm1, %v388_v57 }
  0xd7   :  { %v389_v62 = vmax.f32 %v255_v60, 0.0  ;;  %v270_v0 = vadd.f32 %v939_v61, %v1208_v38 }
  0xd8   :  { %v264_v1 = vpop.f32.mrf.mxu0 }
  0xd9   :  { %v265_v2 = vadd.f32 %v1208_v38, %v264_v1  ;;  %990 = vmatprep.mubr.msk.f32.mxu1 %vm426_vm1, %v389_v62  ;;  %v392_v5 = vmax.f32 %v270_v0, 0.0 }
  0xda   :  { %v942_v3 = vpop.f32.mrf.mxu0  ;;  %991 = vmatmul.mubr.msk.f32.gmra.mxu1 %vm426_vm1, %v390_v63 }
  0xdb   :  { %v391_v4 = vmax.f32 %v265_v2, 0.0  ;;  %v280_v6 = vadd.f32 %v942_v3, %v1208_v38 }
  0xdc   :  { %v274_v7 = vpop.f32.mrf.mxu0 }
  0xdd   :  { %v275_v8 = vadd.f32 %v1208_v38, %v274_v7  ;;  %993 = vmatprep.mubr.msk.f32.mxu1 %vm426_vm1, %v391_v4  ;;  %v394_v11 = vmax.f32 %v280_v6, 0.0 }
  0xde   :  { %v945_v9 = vpop.f32.mrf.mxu0  ;;  %994 = vmatmul.mubr.msk.f32.gmra.mxu1 %vm426_vm1, %v392_v5 }
  0xdf   :  { %v393_v10 = vmax.f32 %v275_v8, 0.0  ;;  %v290_v12 = vadd.f32 %v945_v9, %v1208_v38  ;;  %v1277_v8 = vld [vmem:[%s1443_s4] ss:$0 sm:$0xff] }
  0xe0   :  { %v284_v13 = vpop.f32.mrf.mxu0 }
  0xe1   :  { %v285_v14 = vadd.f32 %v1208_v38, %v284_v13  ;;  %996 = vmatprep.mubr.msk.f32.mxu1 %vm426_vm1, %v393_v10  ;;  %v396_v17 = vmax.f32 %v290_v12, 0.0 }
  0xe2   :  { %v948_v15 = vpop.f32.mrf.mxu0  ;;  %997 = vmatmul.mubr.msk.f32.gmra.mxu1 %vm426_vm1, %v394_v11 }
  0xe3   :  { %v395_v16 = vmax.f32 %v285_v14, 0.0  ;;  %v300_v18 = vadd.f32 %v948_v15, %v1208_v38 }
  0xe4   :  { %v294_v19 = vpop.f32.mrf.mxu0 }
  0xe5   :  { %v295_v20 = vadd.f32 %v1208_v38, %v294_v19  ;;  %999 = vmatprep.mubr.msk.f32.mxu1 %vm426_vm1, %v395_v16  ;;  %v398_v23 = vmax.f32 %v300_v18, 0.0 }
  0xe6   :  { %v951_v21 = vpop.f32.mrf.mxu0  ;;  %1000 = vmatmul.mubr.msk.f32.gmra.mxu1 %vm426_vm1, %v396_v17 }
  0xe7   :  { %v397_v22 = vmax.f32 %v295_v20, 0.0  ;;  %v310_v24 = vadd.f32 %v951_v21, %v1208_v38 }
  0xe8   :  { %v304_v25 = vpop.f32.mrf.mxu0 }
  0xe9   :  { %v305_v26 = vadd.f32 %v1208_v38, %v304_v25  ;;  %1002 = vmatprep.mubr.msk.f32.mxu1 %vm426_vm1, %v397_v22  ;;  %v400_v29 = vmax.f32 %v310_v24, 0.0 }
  0xea   :  { %v954_v27 = vpop.f32.mrf.mxu0  ;;  %1003 = vmatmul.mubr.msk.f32.gmra.mxu1 %vm426_vm1, %v398_v23 }
  0xeb   :  { %v399_v28 = vmax.f32 %v305_v26, 0.0  ;;  %v320_v30 = vadd.f32 %v954_v27, %v1208_v38 }
  0xec   :  { %v314_v31 = vpop.f32.mrf.mxu0 }
  0xed   :  { %v315_v32 = vadd.f32 %v1208_v38, %v314_v31  ;;  %1005 = vmatprep.mubr.msk.f32.mxu1 %vm426_vm1, %v399_v28  ;;  %v402_v35 = vmax.f32 %v320_v30, 0.0 }
  0xee   :  { %v957_v33 = vpop.f32.mrf.mxu0  ;;  %1006 = vmatmul.mubr.msk.f32.gmra.mxu1 %vm426_vm1, %v400_v29 }
  0xef   :  { %v401_v34 = vmax.f32 %v315_v32, 0.0  ;;  %v330_v36 = vadd.f32 %v957_v33, %v1208_v38 }
  0xf0   :  { %v324_v37 = vpop.f32.mrf.mxu0 }
  0xf1   :  { %v325_v39 = vadd.f32 %v1208_v38, %v324_v37  ;;  %1008 = vmatprep.mubr.msk.f32.mxu1 %vm426_vm1, %v401_v34  ;;  %v404_v42 = vmax.f32 %v330_v36, 0.0 }
  0xf2   :  { %v960_v40 = vpop.f32.mrf.mxu0  ;;  %1009 = vmatmul.mubr.msk.f32.gmra.mxu1 %vm426_vm1, %v402_v35 }
  0xf3   :  { %v403_v41 = vmax.f32 %v325_v39, 0.0  ;;  %v340_v43 = vadd.f32 %v960_v40, %v1208_v38 }
  0xf4   :  { %v334_v44 = vpop.f32.mrf.mxu0 }
  0xf5   :  { %v335_v45 = vadd.f32 %v1208_v38, %v334_v44  ;;  %1011 = vmatprep.mubr.msk.f32.mxu1 %vm426_vm1, %v403_v41  ;;  %v406_v48 = vmax.f32 %v340_v43, 0.0 }
  0xf6   :  { %v963_v46 = vpop.f32.mrf.mxu0  ;;  %1012 = vmatmul.mubr.msk.f32.gmra.mxu1 %vm426_vm1, %v404_v42 }
  0xf7   :  { %v405_v47 = vmax.f32 %v335_v45, 0.0  ;;  %v350_v49 = vadd.f32 %v963_v46, %v1208_v38 }
  0xf8   :  { %v344_v50 = vpop.f32.mrf.mxu0 }
  0xf9   :  { %v345_v51 = vadd.f32 %v1208_v38, %v344_v50  ;;  %1014 = vmatprep.mubr.msk.f32.mxu1 %vm426_vm1, %v405_v47  ;;  %v408_v54 = vmax.f32 %v350_v49, 0.0 }
  0xfa   :  { %v966_v52 = vpop.f32.mrf.mxu0  ;;  %1015 = vmatmul.mubr.msk.f32.gmra.mxu1 %vm426_vm1, %v406_v48 }
  0xfb   :  { %v407_v53 = vmax.f32 %v345_v51, 0.0  ;;  %v360_v55 = vadd.f32 %v966_v52, %v1208_v38 }
  0xfc   :  { %v354_v56 = vpop.f32.mrf.mxu0 }
  0xfd   :  { %v355_v57 = vadd.f32 %v1208_v38, %v354_v56  ;;  %1017 = vmatprep.mubr.msk.f32.mxu1 %vm426_vm1, %v407_v53  ;;  %v410_v60 = vmax.f32 %v360_v55, 0.0 }
  0xfe   :  { %v969_v58 = vpop.f32.mrf.mxu0  ;;  %1018 = vmatmul.mubr.msk.f32.gmra.mxu1 %vm426_vm1, %v408_v54 }
  0xff   :  { %v409_v59 = vmax.f32 %v355_v57, 0.0  ;;  %v370_v61 = vadd.f32 %v969_v58, %v1208_v38 }
 0x100   :  { %v364_v62 = vpop.f32.mrf.mxu0 }
 0x101   :  { %v365_v63 = vadd.f32 %v1208_v38, %v364_v62  ;;  %1020 = vmatprep.mubr.msk.f32.mxu1 %vm426_vm1, %v409_v59  ;;  %v412_v2 = vmax.f32 %v370_v61, 0.0 }
 0x102   :  { %v972_v0 = vpop.f32.mrf.mxu0  ;;  %1021 = vmatmul.mubr.msk.f32.gmra.mxu1 %vm426_vm1, %v410_v60 }
 0x103   :  { %v411_v1 = vmax.f32 %v365_v63, 0.0  ;;  %v380_v3 = vadd.f32 %v972_v0, %v1208_v38 }
 0x104   :  { %v374_v4 = vpop.f32.mrf.mxu0 }
 0x105   :  { %v375_v5 = vadd.f32 %v1208_v38, %v374_v4  ;;  %1023 = vmatprep.mubr.msk.f32.mxu1 %vm426_vm1, %v411_v1  ;;  %v414_v7 = vmax.f32 %v380_v3, 0.0 }
 0x106   :  { %1024 = vmatmul.mubr.msk.f32.gmra.mxu1 %vm426_vm1, %v412_v2 }
 0x107   :  { %v413_v6 = vmax.f32 %v375_v5, 0.0 }
 0x109   :  { %1026 = vmatprep.mubr.msk.f32.mxu1 %vm426_vm1, %v413_v6 }
 0x10a   :  { %1027 = vmatmul.mubr.msk.f32.gmra.mxu1 %vm426_vm1, %v414_v7 }
 0x18e   :  { %v983_v9 = vpop.f32.mrf.mxu1 }
 0x18f   :  { %v595_v10 = vadd.f32 %v983_v9, %v1277_v8 }
 0x190   :  { %v589_v38 = vpop.f32.mrf.mxu1 }
 0x191   :  { %750 = vst.msk [vmem:[%s1444_s5 + $0x8] sm:$0xff] %vm748_vm2, %v595_v10  ;;  %v590_v11 = vadd.f32 %v1277_v8, %v589_v38 }
 0x192   :  { %v986_v12 = vpop.f32.mrf.mxu1 }
 0x193   :  { %749 = vst.msk [vmem:[%s1444_s5] sm:$0xff] %vm748_vm2, %v590_v11  ;;  %v605_v13 = vadd.f32 %v986_v12, %v1277_v8 }
 0x194   :  { %v599_v14 = vpop.f32.mrf.mxu1 }
 0x195   :  { %752 = vst.msk [vmem:[%s1444_s5 + $0x18] sm:$0xff] %vm748_vm2, %v605_v13  ;;  %v600_v15 = vadd.f32 %v1277_v8, %v599_v14 }
 0x196   :  { %v989_v16 = vpop.f32.mrf.mxu1 }
 0x197   :  { %751 = vst.msk [vmem:[%s1444_s5 + $0x10] sm:$0xff] %vm748_vm2, %v600_v15  ;;  %v615_v17 = vadd.f32 %v989_v16, %v1277_v8 }
 0x198   :  { %v609_v18 = vpop.f32.mrf.mxu1 }
 0x199   :  { %754 = vst.msk [vmem:[%s1444_s5 + $0x28] sm:$0xff] %vm748_vm2, %v615_v17  ;;  %v610_v19 = vadd.f32 %v1277_v8, %v609_v18 }
 0x19a   :  { %v992_v20 = vpop.f32.mrf.mxu1 }
 0x19b   :  { %753 = vst.msk [vmem:[%s1444_s5 + $0x20] sm:$0xff] %vm748_vm2, %v610_v19  ;;  %v625_v21 = vadd.f32 %v992_v20, %v1277_v8 }
 0x19c   :  { %v619_v22 = vpop.f32.mrf.mxu1 }
 0x19d   :  { %756 = vst.msk [vmem:[%s1444_s5 + $0x38] sm:$0xff] %vm748_vm2, %v625_v21  ;;  %v620_v23 = vadd.f32 %v1277_v8, %v619_v22 }
 0x19e   :  { %v995_v24 = vpop.f32.mrf.mxu1 }
 0x19f   :  { %755 = vst.msk [vmem:[%s1444_s5 + $0x30] sm:$0xff] %vm748_vm2, %v620_v23  ;;  %v635_v25 = vadd.f32 %v995_v24, %v1277_v8 }
 0x1a0   :  { %v629_v26 = vpop.f32.mrf.mxu1 }
 0x1a1   :  { %758 = vst.msk [vmem:[%s1444_s5 + $0x48] sm:$0xff] %vm748_vm2, %v635_v25  ;;  %v630_v27 = vadd.f32 %v1277_v8, %v629_v26 }
 0x1a2   :  { %v998_v28 = vpop.f32.mrf.mxu1 }
 0x1a3   :  { %757 = vst.msk [vmem:[%s1444_s5 + $0x40] sm:$0xff] %vm748_vm2, %v630_v27  ;;  %v645_v29 = vadd.f32 %v998_v28, %v1277_v8 }
 0x1a4   :  { %v639_v30 = vpop.f32.mrf.mxu1 }
 0x1a5   :  { %760 = vst.msk [vmem:[%s1444_s5 + $0x58] sm:$0xff] %vm748_vm2, %v645_v29  ;;  %v640_v31 = vadd.f32 %v1277_v8, %v639_v30 }
 0x1a6   :  { %v1001_v32 = vpop.f32.mrf.mxu1 }
 0x1a7   :  { %759 = vst.msk [vmem:[%s1444_s5 + $0x50] sm:$0xff] %vm748_vm2, %v640_v31  ;;  %v655_v33 = vadd.f32 %v1001_v32, %v1277_v8 }
 0x1a8   :  { %v649_v34 = vpop.f32.mrf.mxu1 }
 0x1a9   :  { %762 = vst.msk [vmem:[%s1444_s5 + $0x68] sm:$0xff] %vm748_vm2, %v655_v33  ;;  %v650_v35 = vadd.f32 %v1277_v8, %v649_v34 }
 0x1aa   :  { %v1004_v36 = vpop.f32.mrf.mxu1 }
 0x1ab   :  { %761 = vst.msk [vmem:[%s1444_s5 + $0x60] sm:$0xff] %vm748_vm2, %v650_v35  ;;  %v665_v37 = vadd.f32 %v1004_v36, %v1277_v8 }
 0x1ac   :  { %v659_v39 = vpop.f32.mrf.mxu1 }
 0x1ad   :  { %764 = vst.msk [vmem:[%s1444_s5 + $0x78] sm:$0xff] %vm748_vm2, %v665_v37  ;;  %v660_v40 = vadd.f32 %v1277_v8, %v659_v39 }
 0x1ae   :  { %v1007_v41 = vpop.f32.mrf.mxu1 }
 0x1af   :  { %763 = vst.msk [vmem:[%s1444_s5 + $0x70] sm:$0xff] %vm748_vm2, %v660_v40  ;;  %v675_v42 = vadd.f32 %v1007_v41, %v1277_v8 }
 0x1b0   :  { %v669_v43 = vpop.f32.mrf.mxu1 }
 0x1b1   :  { %766 = vst.msk [vmem:[%s1444_s5 + $0x88] sm:$0xff] %vm748_vm2, %v675_v42  ;;  %v670_v44 = vadd.f32 %v1277_v8, %v669_v43 }
 0x1b2   :  { %v1010_v45 = vpop.f32.mrf.mxu1 }
 0x1b3   :  { %765 = vst.msk [vmem:[%s1444_s5 + $0x80] sm:$0xff] %vm748_vm2, %v670_v44  ;;  %v685_v46 = vadd.f32 %v1010_v45, %v1277_v8 }
 0x1b4   :  { %v679_v47 = vpop.f32.mrf.mxu1 }
 0x1b5   :  { %768 = vst.msk [vmem:[%s1444_s5 + $0x98] sm:$0xff] %vm748_vm2, %v685_v46  ;;  %v680_v48 = vadd.f32 %v1277_v8, %v679_v47 }
 0x1b6   :  { %v1013_v49 = vpop.f32.mrf.mxu1 }
 0x1b7   :  { %767 = vst.msk [vmem:[%s1444_s5 + $0x90] sm:$0xff] %vm748_vm2, %v680_v48  ;;  %v695_v50 = vadd.f32 %v1013_v49, %v1277_v8 }
 0x1b8   :  { %v689_v51 = vpop.f32.mrf.mxu1 }
 0x1b9   :  { %770 = vst.msk [vmem:[%s1444_s5 + $0xa8] sm:$0xff] %vm748_vm2, %v695_v50  ;;  %v690_v52 = vadd.f32 %v1277_v8, %v689_v51 }
 0x1ba   :  { %v1016_v53 = vpop.f32.mrf.mxu1 }
 0x1bb   :  { %769 = vst.msk [vmem:[%s1444_s5 + $0xa0] sm:$0xff] %vm748_vm2, %v690_v52  ;;  %v705_v54 = vadd.f32 %v1016_v53, %v1277_v8 }
 0x1bc   :  { %v699_v55 = vpop.f32.mrf.mxu1 }
 0x1bd   :  { %772 = vst.msk [vmem:[%s1444_s5 + $0xb8] sm:$0xff] %vm748_vm2, %v705_v54  ;;  %v700_v56 = vadd.f32 %v1277_v8, %v699_v55 }
 0x1be   :  { %v1019_v57 = vpop.f32.mrf.mxu1 }
 0x1bf   :  { %771 = vst.msk [vmem:[%s1444_s5 + $0xb0] sm:$0xff] %vm748_vm2, %v700_v56  ;;  %v715_v58 = vadd.f32 %v1019_v57, %v1277_v8 }
 0x1c0   :  { %v709_v59 = vpop.f32.mrf.mxu1 }
 0x1c1   :  { %774 = vst.msk [vmem:[%s1444_s5 + $0xc8] sm:$0xff] %vm748_vm2, %v715_v58  ;;  %v710_v60 = vadd.f32 %v1277_v8, %v709_v59 }
 0x1c2   :  { %v1022_v61 = vpop.f32.mrf.mxu1 }
 0x1c3   :  { %773 = vst.msk [vmem:[%s1444_s5 + $0xc0] sm:$0xff] %vm748_vm2, %v710_v60  ;;  %v725_v62 = vadd.f32 %v1022_v61, %v1277_v8 }
 0x1c4   :  { %v719_v63 = vpop.f32.mrf.mxu1 }
 0x1c5   :  { %776 = vst.msk [vmem:[%s1444_s5 + $0xd8] sm:$0xff] %vm748_vm2, %v725_v62  ;;  %v720_v0 = vadd.f32 %v1277_v8, %v719_v63 }
 0x1c6   :  { %v1025_v1 = vpop.f32.mrf.mxu1 }
 0x1c7   :  { %775 = vst.msk [vmem:[%s1444_s5 + $0xd0] sm:$0xff] %vm748_vm2, %v720_v0  ;;  %v735_v2 = vadd.f32 %v1025_v1, %v1277_v8 }
 0x1c8   :  { %v729_v3 = vpop.f32.mrf.mxu1 }
 0x1c9   :  { %778 = vst.msk [vmem:[%s1444_s5 + $0xe8] sm:$0xff] %vm748_vm2, %v735_v2  ;;  %v730_v4 = vadd.f32 %v1277_v8, %v729_v3 }
 0x1ca   :  { %v1028_v5 = vpop.f32.mrf.mxu1 }
 0x1cb   :  { %777 = vst.msk [vmem:[%s1444_s5 + $0xe0] sm:$0xff] %vm748_vm2, %v730_v4  ;;  %v745_v6 = vadd.f32 %v1028_v5, %v1277_v8 }
 0x1cc   :  { %v739_v7 = vpop.f32.mrf.mxu1 }
 0x1cd   :  { %780 = vst.msk [vmem:[%s1444_s5 + $0xf8] sm:$0xff] %vm748_vm2, %v745_v6  ;;  %v740_v9 = vadd.f32 %v1277_v8, %v739_v7 }
 0x1cf   :  { %779 = vst.msk [vmem:[%s1444_s5 + $0xf0] sm:$0xff] %vm748_vm2, %v740_v9 }

</bundles_post_ra>
